<compile_context>
chip_gen: v6e
topology: v6e:2x2x1
jax: 0.10.0
libtpu: 0.0.40
codegen_flags: <defaults>
</compile_context>

<pallas_src>
import numpy as np
import jax
import jax.numpy as jnp
from jax.experimental import pallas as pl
from jax.experimental.pallas import tpu as pltpu

# --- architecture (arch = (input_size, hidden_size, act_size)) ---------------
INPUT_SIZE = 8
HIDDEN_SIZE = 32
ACT_SIZE = 4

# --- fixed model constants (from __init__) -----------------------------------
DT, TAU = 20.0, 100.0
ALPHA = DT / TAU                                   # 0.2
NOISE_IN = float(np.sqrt(2.0 / ALPHA) * 0.01)
NOISE_REC = float(np.sqrt(2.0 / ALPHA) * 0.05)
SHARPNESS = 1.0


def rollout_kernel(states_ref, eps_in_ref, eps_rec_ref, h0_ref,
                   wi_ref, bi_ref, wh_ref, wo_ref, bo_ref,
                   o_ref, h_ref, idx_ref,
                   i_scr, h_scr):
    """T recurrent steps in one kernel invocation.

    states_ref  : (T, INPUT_SIZE)   f32 VMEM
    eps_in_ref  : (T, INPUT_SIZE)   f32 VMEM   (pre-drawn N(0,1))
    eps_rec_ref : (T, HIDDEN_SIZE)  f32 VMEM   (pre-drawn N(0,1))
    h0_ref      : (1, HIDDEN_SIZE)  f32 VMEM
    wi/bi/wh/wo/bo : i2h.weight.T, i2h.bias, h2h.weight.T, h2o_act.weight.T, h2o_act.bias
    o_ref       : (T, ACT_SIZE)     f32 VMEM out
    h_ref       : (1, HIDDEN_SIZE)  f32 VMEM out (final hidden)
    idx_ref     : (T, 1)            i32 VMEM out (argmax action index per step)
    i_scr/h_scr : (T, HIDDEN_SIZE)  f32 VMEM scratch
    """
    T = states_ref.shape[0]                        # static at trace time

    # Hoist the recurrent weight once; reused every step.
    wh = wh_ref[...]

    # ---- batched input projection for all T steps (one MXU matmul) ----------
    # i2h(state + noise_in * eps_in) + noise_rec * eps_rec  (additive inside
    # the activation argument, so the recurrent noise folds in here too).
    i_all = (jnp.dot(states_ref[...] + NOISE_IN * eps_in_ref[...],
                     wi_ref[...], preferred_element_type=jnp.float32)
             + bi_ref[...] + NOISE_REC * eps_rec_ref[...])       # (T, H)
    i_scr[...] = i_all

    # ---- the true serial recurrence -----------------------------------------
    def step(t, hidden):
        r = jnp.dot(hidden, wh, preferred_element_type=jnp.float32)   # (1, H)
        x = jnp.maximum(i_scr[pl.ds(t, 1), :] + r, 0.0)                # relu
        new_h = hidden * (1.0 - ALPHA) + x * ALPHA                     # leaky integrate
        h_scr[pl.ds(t, 1), :] = new_h
        return new_h

    hidden = jax.lax.fori_loop(0, T, step, h0_ref[...], unroll=min(8, T))
    h_ref[...] = hidden

    # ---- batched output head + argmax (after the loop) ----------------------
    # softmax(o).argmax() == argmax(o) (softmax is monotonic); first-max
    # tie-break like torch.argmax.
    o_all = jnp.dot(h_scr[...], wo_ref[...],
                    preferred_element_type=jnp.float32) + bo_ref[...]  # (T, ACT)
    o_ref[...] = o_all
    ids = jax.lax.broadcasted_iota(jnp.int32, o_all.shape, 1)
    maxv = jnp.max(o_all, axis=1, keepdims=True)
    idx_ref[...] = jnp.min(jnp.where(o_all == maxv, ids, ACT_SIZE),
                           axis=1, keepdims=True).astype(jnp.int32)    # (T, 1)


def model_rollout(states, hidden, params, seed):
    """Run T recurrent steps in a single Pallas kernel.

    states: (T, INPUT_SIZE) float32
    hidden: (1, HIDDEN_SIZE) or None
    Returns (o_seq (T, ACT_SIZE), final_hidden (1, HIDDEN_SIZE),
             act_idx (T,), actions (T,)).
    """
    states = jnp.asarray(states, jnp.float32).reshape(-1, INPUT_SIZE)
    T = states.shape[0]
    if hidden is None:
        hidden = jnp.zeros((1, HIDDEN_SIZE), jnp.float32)
    wi, bi, wh, wo, bo = params

    # Noise drawn once per rollout outside the kernel (statistically N(0,1);
    # not bit-identical to torch.randn trajectories).
    key = jax.random.PRNGKey(seed)
    k_in, k_rec = jax.random.split(key)
    eps_in = jax.random.normal(k_in, (T, INPUT_SIZE), jnp.float32)
    eps_rec = jax.random.normal(k_rec, (T, HIDDEN_SIZE), jnp.float32)

    vmem = lambda: pl.BlockSpec(memory_space=pltpu.MemorySpace.VMEM)

    o, h_final, idx = pl.pallas_call(
        rollout_kernel,
        out_shape=(
            jax.ShapeDtypeStruct((T, ACT_SIZE), jnp.float32),      # o per step
            jax.ShapeDtypeStruct((1, HIDDEN_SIZE), jnp.float32),   # final hidden
            jax.ShapeDtypeStruct((T, 1), jnp.int32),               # act_idx per step
        ),
        in_specs=[vmem()] * 9,       # states, eps_in, eps_rec, h0, wi, bi, wh, wo, bo
        out_specs=(vmem(), vmem(), vmem()),
        scratch_shapes=[pltpu.VMEM((T, HIDDEN_SIZE), jnp.float32),   # batched i2h
                        pltpu.VMEM((T, HIDDEN_SIZE), jnp.float32)],  # hidden history
    )(states, eps_in, eps_rec, hidden, wi, bi, wh, wo, bo)

    actions_tbl = jnp.linspace(-1.0 + 2.0 / ACT_SIZE, 1.0, ACT_SIZE)
    idx_flat = idx[:, 0]
    action = actions_tbl[idx_flat]
    return o, h_final, idx_flat, action


def model_forward(state, hidden, params, seed):
    """Single step with the original Model.forward semantics: (o, hidden, action)."""
    o, h, _, action = model_rollout(
        jnp.reshape(jnp.asarray(state, jnp.float32), (1, INPUT_SIZE)),
        hidden, params, seed)
    return o, h, action[0]
    # TODO(synk): 'train_pred' mode (h2o_pred head + host-side np.random.choice
    # over self.probs) is a host-side stochastic branch and is not implemented.


def init_params(key):
    """Deterministic init matching nn.Linear shapes (stored transposed)."""
    ks = jax.random.split(key, 5)

    def uinit(k, shape, fan_in):
        lim = 1.0 / np.sqrt(fan_in)
        return jax.random.uniform(k, shape, jnp.float32, -lim, lim)

    wi = uinit(ks[0], (INPUT_SIZE, HIDDEN_SIZE), INPUT_SIZE)    # i2h.weight.T
    bi = uinit(ks[1], (1, HIDDEN_SIZE), INPUT_SIZE)             # i2h.bias
    wh = uinit(ks[2], (HIDDEN_SIZE, HIDDEN_SIZE), HIDDEN_SIZE)  # h2h.weight.T (no bias)
    wo = uinit(ks[3], (HIDDEN_SIZE, ACT_SIZE), HIDDEN_SIZE)     # h2o_act.weight.T
    bo = uinit(ks[4], (1, ACT_SIZE), HIDDEN_SIZE)               # h2o_act.bias
    return wi, bi, wh, wo, bo


if __name__ == "__main__":
    root = jax.random.PRNGKey(0)
    k_params, k_state = jax.random.split(root, 2)

    params = init_params(k_params)

    # Multi-step rollout (T steps fused into one pallas_call).
    T = 8
    states = jax.random.normal(k_state, (T, INPUT_SIZE), jnp.float32)
    o_seq, h_final, idx_seq, action_seq = model_rollout(states, None, params, seed=0)
    jax.block_until_ready((o_seq, h_final, idx_seq, action_seq))

    assert o_seq.shape == (T, ACT_SIZE)
    assert h_final.shape == (1, HIDDEN_SIZE)
    assert idx_seq.shape == (T,)
    assert bool(jnp.all((idx_seq >= 0) & (idx_seq < ACT_SIZE)))
    assert bool(jnp.all(jnp.isfinite(o_seq))) and bool(jnp.all(jnp.isfinite(h_final)))

    # Single step matching Model.forward(state, hidden) with hidden=None.
    o1, h1, act1 = model_forward(states[0], None, params, seed=1)
    jax.block_until_ready((o1, h1, act1))
    assert o1.shape == (1, ACT_SIZE) and h1.shape == (1, HIDDEN_SIZE)

    print("KERNEL_OK")
</pallas_src>

<mosaic_0001>
module attributes {stable_mosaic.version = 11 : i64} {
  func.func @rollout_kernel(%arg0: memref<8x8xf32, #tpu.memory_space<vmem>>, %arg1: memref<8x8xf32, #tpu.memory_space<vmem>>, %arg2: memref<8x32xf32, #tpu.memory_space<vmem>>, %arg3: memref<1x32xf32, #tpu.memory_space<vmem>>, %arg4: memref<8x32xf32, #tpu.memory_space<vmem>>, %arg5: memref<1x32xf32, #tpu.memory_space<vmem>>, %arg6: memref<32x32xf32, #tpu.memory_space<vmem>>, %arg7: memref<32x4xf32, #tpu.memory_space<vmem>>, %arg8: memref<1x4xf32, #tpu.memory_space<vmem>>, %arg9: memref<8x4xf32, #tpu.memory_space<vmem>>, %arg10: memref<1x32xf32, #tpu.memory_space<vmem>>, %arg11: memref<8x1xi32, #tpu.memory_space<vmem>>, %arg12: memref<8x32xf32, #tpu.memory_space<vmem>>, %arg13: memref<8x32xf32, #tpu.memory_space<vmem>>) attributes {dimension_semantics = [], scalar_prefetch = 0 : i64, scratch_operands = 2 : i64, tpu.core_type = #tpu.core_type<tc>} {
    %c0 = arith.constant 0 : index
    %c0_0 = arith.constant 0 : index
    %0 = vector.load %arg6[%c0, %c0_0] : memref<32x32xf32, #tpu.memory_space<vmem>>, vector<32x32xf32>
    %c0_1 = arith.constant 0 : index
    %c0_2 = arith.constant 0 : index
    %1 = vector.load %arg0[%c0_1, %c0_2] : memref<8x8xf32, #tpu.memory_space<vmem>>, vector<8x8xf32>
    %c0_3 = arith.constant 0 : index
    %c0_4 = arith.constant 0 : index
    %2 = vector.load %arg1[%c0_3, %c0_4] : memref<8x8xf32, #tpu.memory_space<vmem>>, vector<8x8xf32>
    %cst = arith.constant 0.0316227749 : f32
    %3 = vector.broadcast %cst : f32 to vector<8x8xf32>
    %4 = arith.mulf %3, %2 : vector<8x8xf32>
    %5 = arith.addf %1, %4 : vector<8x8xf32>
    %c0_5 = arith.constant 0 : index
    %c0_6 = arith.constant 0 : index
    %6 = vector.load %arg4[%c0_5, %c0_6] : memref<8x32xf32, #tpu.memory_space<vmem>>, vector<8x32xf32>
    %cst_7 = arith.constant dense<0.000000e+00> : vector<8x32xf32>
    %7 = tpu.matmul %5, %6, %cst_7 {dimension_numbers = #tpu.dot_dimension_numbers<[1], [0], [0], [1], [0, 0, 1, 1], [], []>} : vector<8x8xf32>, vector<8x32xf32>, vector<8x32xf32> -> vector<8x32xf32>
    %c0_8 = arith.constant 0 : index
    %c0_9 = arith.constant 0 : index
    %8 = vector.load %arg5[%c0_8, %c0_9] : memref<1x32xf32, #tpu.memory_space<vmem>>, vector<1x32xf32>
    %9 = vector.broadcast %8 : vector<1x32xf32> to vector<8x32xf32>
    %10 = arith.addf %7, %9 : vector<8x32xf32>
    %c0_10 = arith.constant 0 : index
    %c0_11 = arith.constant 0 : index
    %11 = vector.load %arg2[%c0_10, %c0_11] : memref<8x32xf32, #tpu.memory_space<vmem>>, vector<8x32xf32>
    %cst_12 = arith.constant 0.158113882 : f32
    %12 = vector.broadcast %cst_12 : f32 to vector<8x32xf32>
    %13 = arith.mulf %12, %11 : vector<8x32xf32>
    %14 = arith.addf %10, %13 : vector<8x32xf32>
    %c0_13 = arith.constant 0 : index
    %c0_14 = arith.constant 0 : index
    %15 = vector.load %arg12[%c0_13, %c0_14] : memref<8x32xf32, #tpu.memory_space<vmem>>, vector<8x32xf32>
    tpu.vector_store %arg12[%c0_13, %c0_14], %14 {strides = array<i32>} : memref<8x32xf32, #tpu.memory_space<vmem>>, vector<8x32xf32>,
    %c0_15 = arith.constant 0 : index
    %c0_16 = arith.constant 0 : index
    %16 = vector.load %arg3[%c0_15, %c0_16] : memref<1x32xf32, #tpu.memory_space<vmem>>, vector<1x32xf32>
    %c0_i32 = arith.constant 0 : i32
    %cst_17 = arith.constant dense<0.000000e+00> : vector<1x32xf32>
    %17 = tpu.matmul %16, %0, %cst_17 {dimension_numbers = #tpu.dot_dimension_numbers<[1], [0], [0], [1], [0, 0, 1, 1], [], []>} : vector<1x32xf32>, vector<32x32xf32>, vector<1x32xf32> -> vector<1x32xf32>
    %18 = arith.index_cast %c0_i32 : i32 to index
    %c0_18 = arith.constant 0 : index
    %19 = vector.load %arg12[%18, %c0_18] : memref<8x32xf32, #tpu.memory_space<vmem>>, vector<1x32xf32>
    %20 = arith.addf %19, %17 : vector<1x32xf32>
    %cst_19 = arith.constant 0.000000e+00 : f32
    %21 = vector.broadcast %cst_19 : f32 to vector<1x32xf32>
    %22 = arith.maximumf %20, %21 : vector<1x32xf32>
    %cst_20 = arith.constant 8.000000e-01 : f32
    %23 = vector.broadcast %cst_20 : f32 to vector<1x32xf32>
    %24 = arith.mulf %16, %23 : vector<1x32xf32>
    %cst_21 = arith.constant 2.000000e-01 : f32
    %25 = vector.broadcast %cst_21 : f32 to vector<1x32xf32>
    %26 = arith.mulf %22, %25 : vector<1x32xf32>
    %27 = arith.addf %24, %26 : vector<1x32xf32>
    %28 = arith.index_cast %c0_i32 : i32 to index
    %c0_22 = arith.constant 0 : index
    %29 = vector.load %arg13[%28, %c0_22] : memref<8x32xf32, #tpu.memory_space<vmem>>, vector<1x32xf32>
    tpu.vector_store %arg13[%28, %c0_22], %27 {strides = array<i32>} : memref<8x32xf32, #tpu.memory_space<vmem>>, vector<1x32xf32>,
    %c1_i32 = arith.constant 1 : i32
    %cst_23 = arith.constant dense<0.000000e+00> : vector<1x32xf32>
    %30 = tpu.matmul %27, %0, %cst_23 {dimension_numbers = #tpu.dot_dimension_numbers<[1], [0], [0], [1], [0, 0, 1, 1], [], []>} : vector<1x32xf32>, vector<32x32xf32>, vector<1x32xf32> -> vector<1x32xf32>
    %31 = arith.index_cast %c1_i32 : i32 to index
    %c0_24 = arith.constant 0 : index
    %32 = vector.load %arg12[%31, %c0_24] : memref<8x32xf32, #tpu.memory_space<vmem>>, vector<1x32xf32>
    %33 = arith.addf %32, %30 : vector<1x32xf32>
    %cst_25 = arith.constant 0.000000e+00 : f32
    %34 = vector.broadcast %cst_25 : f32 to vector<1x32xf32>
    %35 = arith.maximumf %33, %34 : vector<1x32xf32>
    %cst_26 = arith.constant 8.000000e-01 : f32
    %36 = vector.broadcast %cst_26 : f32 to vector<1x32xf32>
    %37 = arith.mulf %27, %36 : vector<1x32xf32>
    %cst_27 = arith.constant 2.000000e-01 : f32
    %38 = vector.broadcast %cst_27 : f32 to vector<1x32xf32>
    %39 = arith.mulf %35, %38 : vector<1x32xf32>
    %40 = arith.addf %37, %39 : vector<1x32xf32>
    %41 = arith.index_cast %c1_i32 : i32 to index
    %c0_28 = arith.constant 0 : index
    %42 = vector.load %arg13[%41, %c0_28] : memref<8x32xf32, #tpu.memory_space<vmem>>, vector<1x32xf32>
    tpu.vector_store %arg13[%41, %c0_28], %40 {strides = array<i32>} : memref<8x32xf32, #tpu.memory_space<vmem>>, vector<1x32xf32>,
    %c2_i32 = arith.constant 2 : i32
    %cst_29 = arith.constant dense<0.000000e+00> : vector<1x32xf32>
    %43 = tpu.matmul %40, %0, %cst_29 {dimension_numbers = #tpu.dot_dimension_numbers<[1], [0], [0], [1], [0, 0, 1, 1], [], []>} : vector<1x32xf32>, vector<32x32xf32>, vector<1x32xf32> -> vector<1x32xf32>
    %44 = arith.index_cast %c2_i32 : i32 to index
    %c0_30 = arith.constant 0 : index
    %45 = vector.load %arg12[%44, %c0_30] : memref<8x32xf32, #tpu.memory_space<vmem>>, vector<1x32xf32>
    %46 = arith.addf %45, %43 : vector<1x32xf32>
    %cst_31 = arith.constant 0.000000e+00 : f32
    %47 = vector.broadcast %cst_31 : f32 to vector<1x32xf32>
    %48 = arith.maximumf %46, %47 : vector<1x32xf32>
    %cst_32 = arith.constant 8.000000e-01 : f32
    %49 = vector.broadcast %cst_32 : f32 to vector<1x32xf32>
    %50 = arith.mulf %40, %49 : vector<1x32xf32>
    %cst_33 = arith.constant 2.000000e-01 : f32
    %51 = vector.broadcast %cst_33 : f32 to vector<1x32xf32>
    %52 = arith.mulf %48, %51 : vector<1x32xf32>
    %53 = arith.addf %50, %52 : vector<1x32xf32>
    %54 = arith.index_cast %c2_i32 : i32 to index
    %c0_34 = arith.constant 0 : index
    %55 = vector.load %arg13[%54, %c0_34] : memref<8x32xf32, #tpu.memory_space<vmem>>, vector<1x32xf32>
    tpu.vector_store %arg13[%54, %c0_34], %53 {strides = array<i32>} : memref<8x32xf32, #tpu.memory_space<vmem>>, vector<1x32xf32>,
    %c3_i32 = arith.constant 3 : i32
    %cst_35 = arith.constant dense<0.000000e+00> : vector<1x32xf32>
    %56 = tpu.matmul %53, %0, %cst_35 {dimension_numbers = #tpu.dot_dimension_numbers<[1], [0], [0], [1], [0, 0, 1, 1], [], []>} : vector<1x32xf32>, vector<32x32xf32>, vector<1x32xf32> -> vector<1x32xf32>
    %57 = arith.index_cast %c3_i32 : i32 to index
    %c0_36 = arith.constant 0 : index
    %58 = vector.load %arg12[%57, %c0_36] : memref<8x32xf32, #tpu.memory_space<vmem>>, vector<1x32xf32>
    %59 = arith.addf %58, %56 : vector<1x32xf32>
    %cst_37 = arith.constant 0.000000e+00 : f32
    %60 = vector.broadcast %cst_37 : f32 to vector<1x32xf32>
    %61 = arith.maximumf %59, %60 : vector<1x32xf32>
    %cst_38 = arith.constant 8.000000e-01 : f32
    %62 = vector.broadcast %cst_38 : f32 to vector<1x32xf32>
    %63 = arith.mulf %53, %62 : vector<1x32xf32>
    %cst_39 = arith.constant 2.000000e-01 : f32
    %64 = vector.broadcast %cst_39 : f32 to vector<1x32xf32>
    %65 = arith.mulf %61, %64 : vector<1x32xf32>
    %66 = arith.addf %63, %65 : vector<1x32xf32>
    %67 = arith.index_cast %c3_i32 : i32 to index
    %c0_40 = arith.constant 0 : index
    %68 = vector.load %arg13[%67, %c0_40] : memref<8x32xf32, #tpu.memory_space<vmem>>, vector<1x32xf32>
    tpu.vector_store %arg13[%67, %c0_40], %66 {strides = array<i32>} : memref<8x32xf32, #tpu.memory_space<vmem>>, vector<1x32xf32>,
    %c4_i32 = arith.constant 4 : i32
    %cst_41 = arith.constant dense<0.000000e+00> : vector<1x32xf32>
    %69 = tpu.matmul %66, %0, %cst_41 {dimension_numbers = #tpu.dot_dimension_numbers<[1], [0], [0], [1], [0, 0, 1, 1], [], []>} : vector<1x32xf32>, vector<32x32xf32>, vector<1x32xf32> -> vector<1x32xf32>
    %70 = arith.index_cast %c4_i32 : i32 to index
    %c0_42 = arith.constant 0 : index
    %71 = vector.load %arg12[%70, %c0_42] : memref<8x32xf32, #tpu.memory_space<vmem>>, vector<1x32xf32>
    %72 = arith.addf %71, %69 : vector<1x32xf32>
    %cst_43 = arith.constant 0.000000e+00 : f32
    %73 = vector.broadcast %cst_43 : f32 to vector<1x32xf32>
    %74 = arith.maximumf %72, %73 : vector<1x32xf32>
    %cst_44 = arith.constant 8.000000e-01 : f32
    %75 = vector.broadcast %cst_44 : f32 to vector<1x32xf32>
    %76 = arith.mulf %66, %75 : vector<1x32xf32>
    %cst_45 = arith.constant 2.000000e-01 : f32
    %77 = vector.broadcast %cst_45 : f32 to vector<1x32xf32>
    %78 = arith.mulf %74, %77 : vector<1x32xf32>
    %79 = arith.addf %76, %78 : vector<1x32xf32>
    %80 = arith.index_cast %c4_i32 : i32 to index
    %c0_46 = arith.constant 0 : index
    %81 = vector.load %arg13[%80, %c0_46] : memref<8x32xf32, #tpu.memory_space<vmem>>, vector<1x32xf32>
    tpu.vector_store %arg13[%80, %c0_46], %79 {strides = array<i32>} : memref<8x32xf32, #tpu.memory_space<vmem>>, vector<1x32xf32>,
    %c5_i32 = arith.constant 5 : i32
    %cst_47 = arith.constant dense<0.000000e+00> : vector<1x32xf32>
    %82 = tpu.matmul %79, %0, %cst_47 {dimension_numbers = #tpu.dot_dimension_numbers<[1], [0], [0], [1], [0, 0, 1, 1], [], []>} : vector<1x32xf32>, vector<32x32xf32>, vector<1x32xf32> -> vector<1x32xf32>
    %83 = arith.index_cast %c5_i32 : i32 to index
    %c0_48 = arith.constant 0 : index
    %84 = vector.load %arg12[%83, %c0_48] : memref<8x32xf32, #tpu.memory_space<vmem>>, vector<1x32xf32>
    %85 = arith.addf %84, %82 : vector<1x32xf32>
    %cst_49 = arith.constant 0.000000e+00 : f32
    %86 = vector.broadcast %cst_49 : f32 to vector<1x32xf32>
    %87 = arith.maximumf %85, %86 : vector<1x32xf32>
    %cst_50 = arith.constant 8.000000e-01 : f32
    %88 = vector.broadcast %cst_50 : f32 to vector<1x32xf32>
    %89 = arith.mulf %79, %88 : vector<1x32xf32>
    %cst_51 = arith.constant 2.000000e-01 : f32
    %90 = vector.broadcast %cst_51 : f32 to vector<1x32xf32>
    %91 = arith.mulf %87, %90 : vector<1x32xf32>
    %92 = arith.addf %89, %91 : vector<1x32xf32>
    %93 = arith.index_cast %c5_i32 : i32 to index
    %c0_52 = arith.constant 0 : index
    %94 = vector.load %arg13[%93, %c0_52] : memref<8x32xf32, #tpu.memory_space<vmem>>, vector<1x32xf32>
    tpu.vector_store %arg13[%93, %c0_52], %92 {strides = array<i32>} : memref<8x32xf32, #tpu.memory_space<vmem>>, vector<1x32xf32>,
    %c6_i32 = arith.constant 6 : i32
    %cst_53 = arith.constant dense<0.000000e+00> : vector<1x32xf32>
    %95 = tpu.matmul %92, %0, %cst_53 {dimension_numbers = #tpu.dot_dimension_numbers<[1], [0], [0], [1], [0, 0, 1, 1], [], []>} : vector<1x32xf32>, vector<32x32xf32>, vector<1x32xf32> -> vector<1x32xf32>
    %96 = arith.index_cast %c6_i32 : i32 to index
    %c0_54 = arith.constant 0 : index
    %97 = vector.load %arg12[%96, %c0_54] : memref<8x32xf32, #tpu.memory_space<vmem>>, vector<1x32xf32>
    %98 = arith.addf %97, %95 : vector<1x32xf32>
    %cst_55 = arith.constant 0.000000e+00 : f32
    %99 = vector.broadcast %cst_55 : f32 to vector<1x32xf32>
    %100 = arith.maximumf %98, %99 : vector<1x32xf32>
    %cst_56 = arith.constant 8.000000e-01 : f32
    %101 = vector.broadcast %cst_56 : f32 to vector<1x32xf32>
    %102 = arith.mulf %92, %101 : vector<1x32xf32>
    %cst_57 = arith.constant 2.000000e-01 : f32
    %103 = vector.broadcast %cst_57 : f32 to vector<1x32xf32>
    %104 = arith.mulf %100, %103 : vector<1x32xf32>
    %105 = arith.addf %102, %104 : vector<1x32xf32>
    %106 = arith.index_cast %c6_i32 : i32 to index
    %c0_58 = arith.constant 0 : index
    %107 = vector.load %arg13[%106, %c0_58] : memref<8x32xf32, #tpu.memory_space<vmem>>, vector<1x32xf32>
    tpu.vector_store %arg13[%106, %c0_58], %105 {strides = array<i32>} : memref<8x32xf32, #tpu.memory_space<vmem>>, vector<1x32xf32>,
    %c7_i32 = arith.constant 7 : i32
    %cst_59 = arith.constant dense<0.000000e+00> : vector<1x32xf32>
    %108 = tpu.matmul %105, %0, %cst_59 {dimension_numbers = #tpu.dot_dimension_numbers<[1], [0], [0], [1], [0, 0, 1, 1], [], []>} : vector<1x32xf32>, vector<32x32xf32>, vector<1x32xf32> -> vector<1x32xf32>
    %109 = arith.index_cast %c7_i32 : i32 to index
    %c0_60 = arith.constant 0 : index
    %110 = vector.load %arg12[%109, %c0_60] : memref<8x32xf32, #tpu.memory_space<vmem>>, vector<1x32xf32>
    %111 = arith.addf %110, %108 : vector<1x32xf32>
    %cst_61 = arith.constant 0.000000e+00 : f32
    %112 = vector.broadcast %cst_61 : f32 to vector<1x32xf32>
    %113 = arith.maximumf %111, %112 : vector<1x32xf32>
    %cst_62 = arith.constant 8.000000e-01 : f32
    %114 = vector.broadcast %cst_62 : f32 to vector<1x32xf32>
    %115 = arith.mulf %105, %114 : vector<1x32xf32>
    %cst_63 = arith.constant 2.000000e-01 : f32
    %116 = vector.broadcast %cst_63 : f32 to vector<1x32xf32>
    %117 = arith.mulf %113, %116 : vector<1x32xf32>
    %118 = arith.addf %115, %117 : vector<1x32xf32>
    %119 = arith.index_cast %c7_i32 : i32 to index
    %c0_64 = arith.constant 0 : index
    %120 = vector.load %arg13[%119, %c0_64] : memref<8x32xf32, #tpu.memory_space<vmem>>, vector<1x32xf32>
    tpu.vector_store %arg13[%119, %c0_64], %118 {strides = array<i32>} : memref<8x32xf32, #tpu.memory_space<vmem>>, vector<1x32xf32>,
    %c8_i32 = arith.constant 8 : i32
    %c0_65 = arith.constant 0 : index
    %c0_66 = arith.constant 0 : index
    %121 = vector.load %arg10[%c0_65, %c0_66] : memref<1x32xf32, #tpu.memory_space<vmem>>, vector<1x32xf32>
    tpu.vector_store %arg10[%c0_65, %c0_66], %118 {strides = array<i32>} : memref<1x32xf32, #tpu.memory_space<vmem>>, vector<1x32xf32>,
    %c0_67 = arith.constant 0 : index
    %c0_68 = arith.constant 0 : index
    %122 = vector.load %arg13[%c0_67, %c0_68] : memref<8x32xf32, #tpu.memory_space<vmem>>, vector<8x32xf32>
    %c0_69 = arith.constant 0 : index
    %c0_70 = arith.constant 0 : index
    %123 = vector.load %arg7[%c0_69, %c0_70] : memref<32x4xf32, #tpu.memory_space<vmem>>, vector<32x4xf32>
    %cst_71 = arith.constant dense<0.000000e+00> : vector<8x4xf32>
    %124 = tpu.matmul %122, %123, %cst_71 {dimension_numbers = #tpu.dot_dimension_numbers<[1], [0], [0], [1], [0, 0, 1, 1], [], []>} : vector<8x32xf32>, vector<32x4xf32>, vector<8x4xf32> -> vector<8x4xf32>
    %c0_72 = arith.constant 0 : index
    %c0_73 = arith.constant 0 : index
    %125 = vector.load %arg8[%c0_72, %c0_73] : memref<1x4xf32, #tpu.memory_space<vmem>>, vector<1x4xf32>
    %126 = vector.broadcast %125 : vector<1x4xf32> to vector<8x4xf32>
    %127 = arith.addf %124, %126 : vector<8x4xf32>
    %c0_74 = arith.constant 0 : index
    %c0_75 = arith.constant 0 : index
    %128 = vector.load %arg9[%c0_74, %c0_75] : memref<8x4xf32, #tpu.memory_space<vmem>>, vector<8x4xf32>
    tpu.vector_store %arg9[%c0_74, %c0_75], %127 {strides = array<i32>} : memref<8x4xf32, #tpu.memory_space<vmem>>, vector<8x4xf32>,
    %129 = tpu.iota {dimensions = array<i32: 1>} : vector<8x4xi32>
    %cst_76 = arith.constant dense<0xFF800000> : vector<8xf32>
    %130 = vector.multi_reduction <maximumf>, %127, %cst_76 [1] : vector<8x4xf32> to vector<8xf32>
    %131 = vector.shape_cast %130 : vector<8xf32> to vector<8x1xf32>
    %132 = vector.broadcast %131 : vector<8x1xf32> to vector<8x4xf32>
    %133 = arith.cmpf oeq, %127, %132 : vector<8x4xf32>
    %c4_i32_77 = arith.constant 4 : i32
    %134 = vector.broadcast %c4_i32_77 : i32 to vector<8x4xi32>
    %135 = arith.select %133, %129, %134 : vector<8x4xi1>, vector<8x4xi32>
    %cst_78 = arith.constant dense<2147483647> : vector<8xi32>
    %136 = vector.multi_reduction <minsi>, %135, %cst_78 [1] : vector<8x4xi32> to vector<8xi32>
    %137 = vector.shape_cast %136 : vector<8xi32> to vector<8x1xi32>
    %c0_79 = arith.constant 0 : index
    %c0_80 = arith.constant 0 : index
    %138 = vector.load %arg11[%c0_79, %c0_80] : memref<8x1xi32, #tpu.memory_space<vmem>>, vector<8x1xi32>
    tpu.vector_store %arg11[%c0_79, %c0_80], %137 {strides = array<i32>} : memref<8x1xi32, #tpu.memory_space<vmem>>, vector<8x1xi32>,
    return
  }
}

</mosaic_0001>

<bundles_post_ra>
// kernel: tpu_custom_call.1
= control target key start
LH: loop header
LB: loop body
LE: loop exit
PB: predicated region body
PF: predicated region fallthrough
CT: control target
= control target key end

     0   :  { %17 = vsyncpa [#allocation5], 0  ;;  %s1435_s0 = inlined_call_operand.vmem [shape: f32[8,8], index: 0, kind: input, shape index: {}]   ;;  %s1436_s1 = inlined_call_operand.hbm [shape: f32[8,8], index: 1, kind: input, shape index: {}]   ;;  %s1437_s2 = inlined_call_operand.hbm [shape: f32[8,32], index: 2, kind: input, shape index: {}]   ;;  %s1438_s3 = inlined_call_operand.vmem [shape: f32[1,32], index: 3, kind: input, shape index: {}]   ;;  %s1439_s4 = inlined_call_operand.hbm [shape: f32[8,32], index: 4, kind: input, shape index: {}]   ;;  %s1440_s5 = inlined_call_operand.vmem [shape: f32[1,32], index: 5, kind: input, shape index: {}]   ;;  %s1441_s6 = inlined_call_operand.vmem [shape: f32[32,32], index: 6, kind: input, shape index: {}]   ;;  %s1442_s7 = inlined_call_operand.vmem [shape: f32[32,4], index: 7, kind: input, shape index: {}]   ;;  %s1443_s8 = inlined_call_operand.vmem [shape: f32[1,4], index: 8, kind: input, shape index: {}]   ;;  %s1444_s9 = inlined_call_operand.vmem [shape: f32[8,4], index: 9, kind: output, shape index: {0}]   ;;  %s1445_s10 = inlined_call_operand.hbm [shape: f32[1,32], index: 10, kind: output, shape index: {1}]   ;;  %s1446_s11 = inlined_call_operand.vmem [shape: s32[8,1], index: 11, kind: output, shape index: {2}]  }
   0x1   :  { %18 = vsyncpa [#allocation8], 0 }
   0x2   :  { %19 = vsyncpa [#allocation6], 0  ;;  %s1199_s17 = smov [#allocation7]   ;;  %s1200_s19 = smov [#allocation4]  }
   0x3   :  { %s38_s18 = sshll.u32 %s1199_s17, 4  ;;  %s28_s20 = sshll.u32 %s1200_s19, 4  ;;  %s39_s18 = int_to_ptr.vmem [resolvable:$true] %s38_s18  ;;  %s29_s20 = int_to_ptr.vmem [resolvable:$true] %s28_s20 }
   0x4   :  { %s1121_s21 = scalar_lea.vmem %s39_s18, 128  ;;  %p1126_p1 = scmp.lt.s32.totalorder %s39_s18, %s39_s18 }
   0x5   :  { %p1122_p0 = scmp.ne.s32.totalorder %s39_s18, %s1121_s21  ;;  %p1127_p2 = scmp.lt.s32.totalorder %s1121_s21, %s1121_s21 }
   0x7   :  { %p1128_p3 = por %p1127_p2, %p1126_p1 }
   0x9   :  { %p1129_p4 = pnand %p1128_p3, %p1122_p0 }
   0xb   :  { %1132 = shalt.err (!%p1129_p4)
}
   0xc   :  { %41 = dma.hbm_to_vmem [thread:$0]  %s1437_s2, 128, %s39_s18, [#allocation8]  }
   0xd   :  { %s1141_s24 = scalar_lea.vmem %s29_s20, 128  ;;  %p1146_p6 = scmp.lt.s32.totalorder %s29_s20, %s29_s20 }
   0xe   :  { %p1142_p5 = scmp.ne.s32.totalorder %s29_s20, %s1141_s24  ;;  %p1147_p7 = scmp.lt.s32.totalorder %s1141_s24, %s1141_s24 }
  0x10   :  { %p1148_p8 = por %p1147_p7, %p1146_p6 }
  0x12   :  { %p1149_p9 = pnand %p1148_p8, %p1142_p5 }
  0x14   :  { %1152 = shalt.err (!%p1149_p9)
}
  0x15   :  { %31 = dma.hbm_to_vmem [thread:$0]  %s1436_s1, 128, %s29_s20, [#allocation5]  }
  0x16   :  { %s1201_s27 = smov [#allocation9]  }
  0x17   :  { %s50_s28 = sshll.u32 %s1201_s27, 4  ;;  %s51_s28 = int_to_ptr.vmem [resolvable:$true] %s50_s28 }
  0x18   :  { %s1161_s29 = scalar_lea.vmem %s51_s28, 128  ;;  %p1166_p11 = scmp.lt.s32.totalorder %s51_s28, %s51_s28 }
  0x19   :  { %p1162_p10 = scmp.ne.s32.totalorder %s51_s28, %s1161_s29  ;;  %p1167_p12 = scmp.lt.s32.totalorder %s1161_s29, %s1161_s29 }
  0x1b   :  { %p1168_p13 = por %p1167_p12, %p1166_p11 }
  0x1d   :  { %p1169_p0 = pnand %p1168_p13, %p1162_p10 }
  0x1f   :  { %1172 = shalt.err (!%p1169_p0)
}
  0x20   :  { %53 = dma.hbm_to_vmem [thread:$0]  %s1439_s4, 128, %s51_s28, [#allocation8]  }
  0x21   :  { %1193 = dma.done.wait [#allocation5], 128  }
  0x22   :  { %1194 = vsyncadd [#allocation5], 4294967168 }
  0x23   :  { %1195 = dma.done.wait [#allocation8], 256  }
  0x24   :  { %1196 = vsyncadd [#allocation8], 4294967040  ;;  %v1202_v0 = vmov 0.0   ;;  %vm1203_vm0 = vmmov 0   ;;  %v79_v1 = vld [vmem:[#allocation9] sm:$0xff]  ;;  %v76_v3 = vld [vmem:[#allocation4] sm:$0xff] }
  0x25   :  { %1003 = vmatprep.subr.mxu0 %v1202_v0  ;;  %1005 = vmatprep.mubr.msk.f32.mxu0 %vm1203_vm0, %v1202_v0  ;;  %v75_v2 = vld [vmem:[%s1435_s0] sm:$0xff]  ;;  %v77_v4 = vmul.f32 0.031622775, %v76_v3  ;;  %v1286_v5 = vld [vmem:[%s1441_s6 + $0x18] sm:$0xff]  ;;  %v1291_v6 = vld [vmem:[%s1441_s6 + $0x10] sm:$0xff]  ;;  %vm87_vm1 = vcmask 64512  }
  0x26   :  { %1008 = vmatprep.subr.mxu1 %v1202_v0  ;;  %1016 = vmatprep.mubr.msk.f32.mxu1 %vm1203_vm0, %v1202_v0  ;;  %v1299_v8 = vld [vmem:[%s1441_s6 + $0x8] sm:$0xff]  ;;  %v1306_v9 = vld [vmem:[%s1441_s6] sm:$0xff]  ;;  %vm164_vm2 = vcmask 261120   ;;  %v161_v11 = vld [vmem:[#allocation7] sm:$0xff]  ;;  %vm246_vm3 = vcmask 253952   ;;  %vm894_vm4 = vcmask 31744  }
  0x27   :  { %1004 = vmatpush3.msra.mxu0 %v79_v1  ;;  %1009 = vmatpush3.msra.mxu1 %v1286_v5  ;;  %v78_v7 = vadd.f32 %v77_v4, %v75_v2  ;;  %v166_v10 = vld [vmem:[%s1438_s3] sm:$0x1]  ;;  %v162_v13 = vmul.f32 0.15811388, %v161_v11  ;;  %v813_v11 = vld [vmem:[%s1442_s7 + $0x18] sm:$0xff] }
  0x28   :  { %1019 = vmatprep.subr.mxu0 %v1202_v0  ;;  %1010 = vmatprep.subr.mxu1 %v1202_v0  ;;  %v944_v12 = vld [vmem:[%s1440_s5] ss:$0 sm:$0xff]  ;;  %v243_v22 = vmul.f32 0.8, %v166_v10 }
  0x29   :  { %1011 = vmatpush3.msra.mxu1 %v1291_v6  ;;  %1006 = vmatmul.mubr.msk.f32.vlgmr.msra.gmra.mxu0 %vm87_vm1, %v78_v7 }
  0x2a   :  { %1012 = vmatprep.subr.mxu1 %v1202_v0  ;;  %1020 = vmatpush3.msra.mxu0 %v1286_v5 }
  0x2b   :  { %1013 = vmatpush3.msra.mxu1 %v1299_v8  ;;  %1021 = vmatprep.subr.mxu0 %v1202_v0 }
  0x2c   :  { %1014 = vmatprep.subr.mxu1 %v1202_v0  ;;  %1022 = vmatpush3.msra.mxu0 %v1291_v6 }
  0x2d   :  { %1015 = vmatpush3.msra.mxu1 %v1306_v9  ;;  %1023 = vmatprep.subr.mxu0 %v1202_v0 }
  0x2e   :  { %1017 = vmatmul.mubr.msk.f32.vlgmr.msra.gmra.mxu1 %vm164_vm2, %v166_v10  ;;  %1024 = vmatpush3.msra.mxu0 %v1299_v8 }
  0x2f   :  { %1027 = vmatprep.mubr.msk.f32.mxu0 %vm1203_vm0, %v1202_v0  ;;  %1025 = vmatprep.subr.mxu0 %v1202_v0 }
  0x30   :  { %1030 = vmatprep.subr.mxu1 %v1202_v0  ;;  %1026 = vmatpush3.msra.mxu0 %v1306_v9 }
  0x31   :  { %1031 = vmatpush3.msra.mxu1 %v1286_v5  ;;  %1038 = vmatprep.mubr.msk.f32.mxu1 %vm1203_vm0, %v1202_v0 }
  0x32   :  { %1032 = vmatprep.subr.mxu1 %v1202_v0  ;;  %1041 = vmatprep.subr.mxu0 %v1202_v0 }
  0x33   :  { %1033 = vmatpush3.msra.mxu1 %v1291_v6 }
  0x34   :  { %1034 = vmatprep.subr.mxu1 %v1202_v0 }
  0x35   :  { %1035 = vmatpush3.msra.mxu1 %v1299_v8 }
  0x36   :  { %1036 = vmatprep.subr.mxu1 %v1202_v0 }
  0x37   :  { %1037 = vmatpush3.msra.mxu1 %v1306_v9 }
  0x38   :  { %1052 = vmatprep.subr.mxu1 %v1202_v0 }
  0xe9   :  { %v157_v14 = vpop.f32.mrf.mxu0 }
  0xea   :  { %v158_v15 = vadd.f32 %v944_v12, %v157_v14  ;;  %v812_v12 = vld [vmem:[%s1442_s7 + $0x10] sm:$0xff]  ;;  %v810_v14 = vld [vmem:[%s1442_s7] sm:$0xff] }
  0xeb   :  { %v1007_v16 = vpop.f32.mrf.mxu0 }
  0xec   :  { %v163_v17 = vadd.f32 %v162_v13, %v158_v15  ;;  %v811_v13 = vld [vmem:[%s1442_s7 + $0x8] sm:$0xff] }
  0xee   :  { %v236_v18 = vpop.f32.mrf.mxu1  ;;  %165 = vst.msk [vmem:[#allocation2] sm:$0xff] %vm164_vm2, %v163_v17 }
  0xf0   :  { %v1018_v19 = vpop.f32.mrf.mxu1 }
  0xf5   :  { %v240_v20 = vld [vmem:[#allocation2] sm:$0x1]  ;;  %v321_v27 = vld [vmem:[#allocation2 + $0x1] sm:$0x1]  ;;  %v401_v35 = vld [vmem:[#allocation2 + $0x2] sm:$0x1] }
  0xf6   :  { %v241_v21 = vadd.f32 %v240_v20, %v236_v18  ;;  %v481_v43 = vld [vmem:[#allocation2 + $0x3] sm:$0x1]  ;;  %v561_v51 = vld [vmem:[#allocation2 + $0x4] sm:$0x1]  ;;  %v641_v59 = vld [vmem:[#allocation2 + $0x5] sm:$0x1] }
  0xf7   :  { %v721_v4 = vld [vmem:[#allocation2 + $0x6] sm:$0x1]  ;;  %v801_v16 = vld [vmem:[#allocation2 + $0x7] sm:$0x1] }
  0xf8   :  { %v242_v23 = vmax.f32 %v241_v21, 0.0 }
  0xfa   :  { %v244_v24 = vmul.f32 0.2, %v242_v23 }
  0xfc   :  { %v245_v25 = vadd.f32 %v244_v24, %v243_v22 }
  0xfe   :  { %247 = vst.msk [vmem:[#allocation3] sm:$0x1] %vm246_vm3, %v245_v25  ;;  %1028 = vmatmul.mubr.msk.f32.vlgmr.msra.gmra.mxu0 %vm164_vm2, %v245_v25  ;;  %v324_v31 = vmul.f32 0.8, %v245_v25 }
  0xff   :  { %1042 = vmatpush3.msra.mxu0 %v1286_v5  ;;  %1049 = vmatprep.mubr.msk.f32.mxu0 %vm1203_vm0, %v1202_v0 }
 0x100   :  { %1043 = vmatprep.subr.mxu0 %v1202_v0 }
 0x101   :  { %1044 = vmatpush3.msra.mxu0 %v1291_v6 }
 0x102   :  { %1045 = vmatprep.subr.mxu0 %v1202_v0 }
 0x103   :  { %1046 = vmatpush3.msra.mxu0 %v1299_v8 }
 0x104   :  { %1047 = vmatprep.subr.mxu0 %v1202_v0 }
 0x105   :  { %1048 = vmatpush3.msra.mxu0 %v1306_v9 }
 0x106   :  { %1063 = vmatprep.subr.mxu0 %v1202_v0 }
 0x1be   :  { %v317_v26 = vpop.f32.mrf.mxu0 }
 0x1bf   :  { %v322_v28 = vadd.f32 %v321_v27, %v317_v26 }
 0x1c0   :  { %v1029_v29 = vpop.f32.mrf.mxu0 }
 0x1c1   :  { %v323_v30 = vmax.f32 %v322_v28, 0.0  ;;  %v896_v28 = vlaneseq }
 0x1c3   :  { %v325_v32 = vmul.f32 0.2, %v323_v30  ;;  %v897_v29 = vand.u32 127, %v896_v28 }
 0x1c5   :  { %v326_v33 = vadd.f32 %v325_v32, %v324_v31 }
 0x1c7   :  { %327 = vst.msk [vmem:[#allocation3 + $0x1] sm:$0x1] %vm246_vm3, %v326_v33  ;;  %1039 = vmatmul.mubr.msk.f32.vlgmr.msra.gmra.mxu1 %vm164_vm2, %v326_v33  ;;  %v404_v39 = vmul.f32 0.8, %v326_v33 }
 0x1c8   :  { %1053 = vmatpush3.msra.mxu1 %v1286_v5  ;;  %1060 = vmatprep.mubr.msk.f32.mxu1 %vm1203_vm0, %v1202_v0 }
 0x1c9   :  { %1054 = vmatprep.subr.mxu1 %v1202_v0 }
 0x1ca   :  { %1055 = vmatpush3.msra.mxu1 %v1291_v6 }
 0x1cb   :  { %1056 = vmatprep.subr.mxu1 %v1202_v0 }
 0x1cc   :  { %1057 = vmatpush3.msra.mxu1 %v1299_v8 }
 0x1cd   :  { %1058 = vmatprep.subr.mxu1 %v1202_v0 }
 0x1ce   :  { %1059 = vmatpush3.msra.mxu1 %v1306_v9 }
 0x1cf   :  { %1074 = vmatprep.subr.mxu1 %v1202_v0 }
 0x287   :  { %v397_v34 = vpop.f32.mrf.mxu1 }
 0x288   :  { %v402_v36 = vadd.f32 %v401_v35, %v397_v34 }
 0x289   :  { %v1040_v37 = vpop.f32.mrf.mxu1 }
 0x28a   :  { %v403_v38 = vmax.f32 %v402_v36, 0.0 }
 0x28c   :  { %v405_v40 = vmul.f32 0.2, %v403_v38 }
 0x28e   :  { %v406_v41 = vadd.f32 %v405_v40, %v404_v39 }
 0x290   :  { %407 = vst.msk [vmem:[#allocation3 + $0x2] sm:$0x1] %vm246_vm3, %v406_v41  ;;  %1050 = vmatmul.mubr.msk.f32.vlgmr.msra.gmra.mxu0 %vm164_vm2, %v406_v41  ;;  %v484_v47 = vmul.f32 0.8, %v406_v41 }
 0x291   :  { %1064 = vmatpush3.msra.mxu0 %v1286_v5  ;;  %1071 = vmatprep.mubr.msk.f32.mxu0 %vm1203_vm0, %v1202_v0 }
 0x292   :  { %1065 = vmatprep.subr.mxu0 %v1202_v0 }
 0x293   :  { %1066 = vmatpush3.msra.mxu0 %v1291_v6 }
 0x294   :  { %1067 = vmatprep.subr.mxu0 %v1202_v0 }
 0x295   :  { %1068 = vmatpush3.msra.mxu0 %v1299_v8 }
 0x296   :  { %1069 = vmatprep.subr.mxu0 %v1202_v0 }
 0x297   :  { %1070 = vmatpush3.msra.mxu0 %v1306_v9 }
 0x298   :  { %1085 = vmatprep.subr.mxu0 %v1202_v0 }
 0x350   :  { %v477_v42 = vpop.f32.mrf.mxu0 }
 0x351   :  { %v482_v44 = vadd.f32 %v481_v43, %v477_v42 }
 0x352   :  { %v1051_v45 = vpop.f32.mrf.mxu0 }
 0x353   :  { %v483_v46 = vmax.f32 %v482_v44, 0.0 }
 0x355   :  { %v485_v48 = vmul.f32 0.2, %v483_v46 }
 0x357   :  { %v486_v49 = vadd.f32 %v485_v48, %v484_v47 }
 0x359   :  { %487 = vst.msk [vmem:[#allocation3 + $0x3] sm:$0x1] %vm246_vm3, %v486_v49  ;;  %1061 = vmatmul.mubr.msk.f32.vlgmr.msra.gmra.mxu1 %vm164_vm2, %v486_v49  ;;  %v564_v55 = vmul.f32 0.8, %v486_v49 }
 0x35a   :  { %1075 = vmatpush3.msra.mxu1 %v1286_v5  ;;  %1082 = vmatprep.mubr.msk.f32.mxu1 %vm1203_vm0, %v1202_v0 }
 0x35b   :  { %1076 = vmatprep.subr.mxu1 %v1202_v0 }
 0x35c   :  { %1077 = vmatpush3.msra.mxu1 %v1291_v6 }
 0x35d   :  { %1078 = vmatprep.subr.mxu1 %v1202_v0 }
 0x35e   :  { %1079 = vmatpush3.msra.mxu1 %v1299_v8 }
 0x35f   :  { %1080 = vmatprep.subr.mxu1 %v1202_v0 }
 0x360   :  { %1081 = vmatpush3.msra.mxu1 %v1306_v9 }
 0x361   :  { %1096 = vmatprep.subr.mxu1 %v1202_v0 }
 0x419   :  { %v557_v50 = vpop.f32.mrf.mxu1 }
 0x41a   :  { %v562_v52 = vadd.f32 %v561_v51, %v557_v50 }
 0x41b   :  { %v1062_v53 = vpop.f32.mrf.mxu1 }
 0x41c   :  { %v563_v54 = vmax.f32 %v562_v52, 0.0 }
 0x41e   :  { %v565_v56 = vmul.f32 0.2, %v563_v54 }
 0x420   :  { %v566_v57 = vadd.f32 %v565_v56, %v564_v55 }
 0x422   :  { %567 = vst.msk [vmem:[#allocation3 + $0x4] sm:$0x1] %vm246_vm3, %v566_v57  ;;  %1072 = vmatmul.mubr.msk.f32.vlgmr.msra.gmra.mxu0 %vm164_vm2, %v566_v57  ;;  %v644_v63 = vmul.f32 0.8, %v566_v57 }
 0x423   :  { %1086 = vmatpush3.msra.mxu0 %v1286_v5  ;;  %1093 = vmatprep.mubr.msk.f32.mxu0 %vm1203_vm0, %v1202_v0 }
 0x424   :  { %1087 = vmatprep.subr.mxu0 %v1202_v0 }
 0x425   :  { %1088 = vmatpush3.msra.mxu0 %v1291_v6 }
 0x426   :  { %1089 = vmatprep.subr.mxu0 %v1202_v0 }
 0x427   :  { %1090 = vmatpush3.msra.mxu0 %v1299_v8 }
 0x428   :  { %1091 = vmatprep.subr.mxu0 %v1202_v0 }
 0x429   :  { %1092 = vmatpush3.msra.mxu0 %v1306_v9 }
 0x4e2   :  { %v637_v58 = vpop.f32.mrf.mxu0 }
 0x4e3   :  { %v642_v60 = vadd.f32 %v641_v59, %v637_v58 }
 0x4e4   :  { %v1073_v61 = vpop.f32.mrf.mxu0 }
 0x4e5   :  { %v643_v62 = vmax.f32 %v642_v60, 0.0 }
 0x4e7   :  { %v645_v1 = vmul.f32 0.2, %v643_v62 }
 0x4e9   :  { %v646_v2 = vadd.f32 %v645_v1, %v644_v63 }
 0x4eb   :  { %647 = vst.msk [vmem:[#allocation3 + $0x5] sm:$0x1] %vm246_vm3, %v646_v2  ;;  %1083 = vmatmul.mubr.msk.f32.vlgmr.msra.gmra.mxu1 %vm164_vm2, %v646_v2  ;;  %v724_v8 = vmul.f32 0.8, %v646_v2 }
 0x4ec   :  { %1104 = vmatprep.mubr.msk.f32.mxu1 %vm1203_vm0, %v1202_v0  ;;  %1097 = vmatpush3.msra.mxu1 %v813_v11 }
 0x4ed   :  { %1098 = vmatprep.subr.mxu1 %v1202_v0 }
 0x4ee   :  { %1099 = vmatpush3.msra.mxu1 %v812_v12 }
 0x4ef   :  { %1100 = vmatprep.subr.mxu1 %v1202_v0 }
 0x4f0   :  { %1101 = vmatpush3.msra.mxu1 %v811_v13 }
 0x4f1   :  { %1102 = vmatprep.subr.mxu1 %v1202_v0  ;;  %v954_v0 = vld [vmem:[%s1443_s8] ss:$0 sm:$0xff]  ;;  %s1204_s8 = smov [#allocation10]  }
 0x4f2   :  { %1103 = vmatpush3.msra.mxu1 %v810_v14  ;;  %s928_s30 = sshll.u32 %s1204_s8, 4  ;;  %s929_s30 = int_to_ptr.vmem [resolvable:$true] %s928_s30 }
 0x4f3   :  { %s1177_s1 = scalar_lea.vmem %s929_s30, 32  ;;  %p1178_p2 = scmp.lt.s32.totalorder %s929_s30, %s929_s30 }
 0x5ab   :  { %v717_v3 = vpop.f32.mrf.mxu1 }
 0x5ac   :  { %v722_v5 = vadd.f32 %v721_v4, %v717_v3 }
 0x5ad   :  { %v1084_v6 = vpop.f32.mrf.mxu1 }
 0x5ae   :  { %v723_v7 = vmax.f32 %v722_v5, 0.0 }
 0x5b0   :  { %v725_v9 = vmul.f32 0.2, %v723_v7 }
 0x5b2   :  { %v726_v10 = vadd.f32 %v725_v9, %v724_v8 }
 0x5b4   :  { %727 = vst.msk [vmem:[#allocation3 + $0x6] sm:$0x1] %vm246_vm3, %v726_v10  ;;  %1094 = vmatmul.mubr.msk.f32.vlgmr.msra.gmra.mxu0 %vm164_vm2, %v726_v10  ;;  %v804_v20 = vmul.f32 0.8, %v726_v10 }
 0x674   :  { %v797_v15 = vpop.f32.mrf.mxu0 }
 0x675   :  { %v802_v17 = vadd.f32 %v801_v16, %v797_v15 }
 0x676   :  { %v1095_v18 = vpop.f32.mrf.mxu0 }
 0x677   :  { %v803_v19 = vmax.f32 %v802_v17, 0.0 }
 0x679   :  { %v805_v21 = vmul.f32 0.2, %v803_v19 }
 0x67b   :  { %v806_v22 = vadd.f32 %v805_v21, %v804_v20 }
 0x67d   :  { %807 = vst.msk [vmem:[#allocation3 + $0x7] sm:$0x1] %vm246_vm3, %v806_v22  ;;  %808 = vst.msk [vmem:[#allocation10] sm:$0x1] %vm246_vm3, %v806_v22 }
 0x684   :  { %v809_v23 = vld [vmem:[#allocation3] sm:$0xff] }
 0x685   :  { %1105 = vmatmul.mubr.msk.f32.vlgmr.msra.gmra.mxu1 %vm164_vm2, %v809_v23 }
 0x745   :  { %v890_v24 = vpop.f32.mrf.mxu1 }
 0x746   :  { %v891_v25 = vadd.f32 %v954_v0, %v890_v24 }
 0x747   :  { %v1106_v26 = vpop.f32.mrf.mxu1 }
 0x748   :  { %v898_v27 = vsel %vm894_vm4, %v891_v25, -inf  ;;  %895 = vst.msk [vmem:[%s1444_s9] sm:$0xff] %vm894_vm4, %v891_v25  ;;  %s1173_s9 = scalar_lea.vmem %s929_s30, 16 }
 0x749   :  { %899 = vmax.xlane.f32.xlu0 %v898_v27  ;;  %p1174_p1 = scmp.ne.s32.totalorder %s929_s30, %s1173_s9  ;;  %p1179_p3 = scmp.lt.s32.totalorder %s1177_s1, %s1173_s9 }
 0x74b   :  { %p1180_p4 = por %p1179_p3, %p1178_p2 }
 0x74d   :  { %p1181_p5 = pnand %p1180_p4, %p1174_p1 }
 0x7d2   :  { %v900_v30 = vpop.xlane.xlu0 %899 }
 0x7d3   :  { %vm901_vm5 = vcmp.eq.f32.partialorder %v891_v25, %v900_v30 }
 0x7d4   :  { %v902_v31 = vsel %vm901_vm5, %v897_v29, 4 }
 0x7d5   :  { %v903_v32 = vsel %vm894_vm4, %v902_v31, 2147483647 }
 0x7d6   :  { %v905_v33 = vshra.s32 %v903_v32, 16  ;;  %v904_v35 = vand.u32 65535, %v903_v32 }
 0x7d8   :  { %v907_v34 = vcvt.s32.f32 %v905_v33  ;;  %v906_v37 = vcvt.s32.f32 %v904_v35 }
 0x7da   :  { %908 = vmin.xlane.f32.xlu0 %v907_v34 }
 0x863   :  { %v909_v36 = vpop.xlane.xlu0 %908 }
 0x864   :  { %vm910_vm6 = vcmp.eq.f32.partialorder %v907_v34, %v909_v36 }
 0x865   :  { %v911_v38 = vsel %vm910_vm6, %v906_v37, inf }
 0x866   :  { %912 = vmin.xlane.f32.xlu1 %v911_v38 }
 0x867   :  { %1184 = shalt.err (!%p1181_p5)
}
 0x868   :  { %931 = dma.vmem_to_hbm [thread:$0]  %s929_s30, 16, %s1445_s10, [#allocation6]   ;;  %v915_v39 = vcvt.f32.s32 %v909_v36  ;;  %vm918_vm7 = vcmask 7168  }
 0x86a   :  { %v916_v41 = vshll.u32 %v915_v39, 16 }
 0x8ef   :  { %v913_v40 = vpop.xlane.xlu1 %912 }
 0x8f0   :  { %v914_v42 = vcvt.f32.s32 %v913_v40 }
 0x8f2   :  { %v917_v43 = vadd.s32 %v916_v41, %v914_v42 }
 0x8f4   :  { %919 = vst.msk [vmem:[%s1446_s11] sm:$0xff] %vm918_vm7, %v917_v43 }
 0x8f5   :  { %1197 = dma.done.wait [#allocation6], 16  }
 0x8f6   :  { %1198 = vsyncadd [#allocation6], 4294967280 }
 0x8f7   :  { %941 = vsyncpa [#allocation5], 1 }
 0x8f8   :  { %942 = vsyncpa [#allocation8], 1 }
 0x8f9   :  { %943 = vsyncpa [#allocation6], 1 }

</bundles_post_ra>
